<compile_context>
chip_gen: v7x
topology: tpu7x:2x2x1
jax: 0.10.0
libtpu: 0.0.40
codegen_flags: <defaults>
</compile_context>

<pallas_src>
import functools

import jax
import jax.numpy as jnp
from jax import lax
from jax.experimental import pallas as pl
from jax.experimental.pallas import tpu as pltpu

MIN_CONFIDENCE = 0.3  # deep_sort.yaml: DEEPSORT.MIN_CONFIDENCE
_LANE = 128
_BBOX_ROWS = 8


def _round_up(x, m):
    return ((x + m - 1) // m) * m


# -----------------------------------------------------------------------------
# Fused kernel: bbox tlwh + keep mask, cosine cost tile, running row-min.
#
# Grid = (2, num_det_tiles, gallery_tiles_per_half).
#   axis 0 ("parallel"): which half of the gallery range (feeds both v7x TCs)
#   axis 1 ("parallel"): detection tile
#   axis 2 ("arbitrary"): gallery tile within the half (running-min accumulator)
# bbox/tlwh/min outputs are resident across axis 2 (same block index for all j),
# so the bbox transform + detection normalization run only at j == 0.
# -----------------------------------------------------------------------------
def _deepsort_update_kernel(min_confidence, gal_tiles_per_half, tile_m,
                            m_ref,                        # scalar prefetch (SMEM)
                            bbox_ref, det_ref, gal_ref,   # inputs
                            tlwh_ref, cost_ref, min_ref,  # outputs
                            det_norm_ref):                # scratch (bf16)
    h = pl.program_id(0)
    j = pl.program_id(2)

    @pl.when(j == 0)
    def _init():
        # ---- bbox path on the transposed, lane-dense (8, 128k) layout ----
        #   input rows : [x1, y1, x2, y2, conf, 0, 0, 0]
        #   output rows: [tl_x, tl_y, w, h, keep, 0, 0, 0]
        # NOTE: intentionally reproduces the original mmdet code exactly,
        # including the known _xyxy_to_xywh quirk where (x1, y1) is later
        # treated as a center by _xywh_to_tlwh -> tl = (x1 - w/2, y1 - h/2).
        bb = bbox_ref[...]
        row = lax.broadcasted_iota(jnp.int32, bb.shape, 0)
        shifted = pltpu.roll(bb, shift=6, axis=0)            # rows 0,1 -> x2,y2
        # int() truncation followed by max(., 0) == max(trunc(.), 0)
        wh = jnp.maximum(jnp.trunc(shifted - bb), 0.0)       # rows 0,1 -> w,h
        wh2 = pltpu.roll(wh, shift=2, axis=0)                # rows 2,3 -> w,h
        tl = bb - 0.5 * wh                                   # rows 0,1 -> tl
        keep = (bb > min_confidence).astype(jnp.float32)     # row 4 meaningful
        tlwh_ref[...] = jnp.where(row < 2, tl,
                         jnp.where(row < 4, wh2,
                          jnp.where(row == 4, keep, 0.0)))

        # ---- normalize detection features once per (half, detection tile) ----
        a = det_ref[...].astype(jnp.float32)
        inv = lax.rsqrt(jnp.sum(a * a, axis=-1, keepdims=True) + 1e-12)
        det_norm_ref[...] = (a * inv).astype(det_norm_ref.dtype)

        # ---- init running min ----
        min_ref[...] = jnp.full_like(min_ref, jnp.inf)

    # ---- cosine cost tile: bf16 x bf16 on the MXU, f32 accumulate ----
    # Gallery is pre-transposed to (d, M) outside the kernel, so this is a
    # plain NN contraction (no per-step XLU transpose of the gallery tile).
    cost = 1.0 - lax.dot_general(
        det_norm_ref[...], gal_ref[...],
        dimension_numbers=(((1,), (0,)), ((), ())),
        preferred_element_type=jnp.float32)
    cost_ref[...] = cost.astype(cost_ref.dtype)

    # ---- fused per-detection running min over the gallery axis ----
    # Padding mask runs only on tiles that actually contain padded columns.
    m_true = m_ref[0]
    gal_start = (h * gal_tiles_per_half + j) * tile_m

    @pl.when(gal_start + tile_m > m_true)
    def _min_masked():
        col = gal_start + lax.broadcasted_iota(jnp.int32, cost.shape, 1)
        cv = jnp.where(col < m_true, cost, jnp.inf)
        rmin = jnp.min(cv, axis=1, keepdims=True)
        min_ref[...] = jnp.minimum(min_ref[...],
                                   jnp.broadcast_to(rmin, min_ref.shape))

    @pl.when(gal_start + tile_m <= m_true)
    def _min_unmasked():
        rmin = jnp.min(cost, axis=1, keepdims=True)
        min_ref[...] = jnp.minimum(min_ref[...],
                                   jnp.broadcast_to(rmin, min_ref.shape))


def deepsort_update_pallas(bbox_xyxy, confidences, det_features, gallery_norm,
                           *, min_confidence=MIN_CONFIDENCE, tile_m=2048):
    """One fused Pallas launch for the DeepSORT update hot path.

    Returns (tlwh (N,4) f32, keep (N,) f32, cost (N,M) bf16, min_cost (N,) f32).
    `gallery_norm` must already be L2-normalized (persists across frames).
    """
    n = bbox_xyxy.shape[0]
    nd, d = det_features.shape
    m, d2 = gallery_norm.shape
    assert nd == n and d == d2 and n > 0 and m > 0
    # TODO(synk): empty-detection / empty-gallery frames are handled host-side
    # in the original update(); not expressible as a fixed-shape kernel.

    # ---- detection-axis bucketing (pow2 up to 128, then 128 steps) ----
    if n <= _LANE:
        tn = max(8, pl.next_power_of_2(n))
        n_pad = tn
    else:
        tn = _LANE
        n_pad = _round_up(n, tn)
    bn_pad = max(n_pad, _LANE)   # bbox/tlwh slab always lane-dense (8, 128k)

    # ---- gallery-axis bucketing + 2-way half split (v7x megacore) ----
    tile_m = max(256, _round_up(int(tile_m), 256))
    if _round_up(m, 512) <= 2 * tile_m:
        m_pad = _round_up(m, 512)
        tm = m_pad // 2                       # gallery collapsed: 1 tile / half
    else:
        m_pad = _round_up(m, 2 * tile_m)
        tm = tile_m
    gph = (m_pad // 2) // tm                  # gallery tiles per half

    # ---- padded, layout-friendly inputs ----
    bbox_t = jnp.zeros((_BBOX_ROWS, bn_pad), jnp.float32)
    bbox_t = bbox_t.at[0:4, :n].set(bbox_xyxy.astype(jnp.float32).T)
    bbox_t = bbox_t.at[4, :n].set(confidences.astype(jnp.float32))

    det_p = jnp.zeros((n_pad, d), jnp.bfloat16).at[:n].set(
        det_features.astype(jnp.bfloat16))
    gal_t = jnp.zeros((d, m_pad), jnp.bfloat16).at[:, :m].set(
        gallery_norm.T.astype(jnp.bfloat16))

    m_scalar = jnp.array([m], dtype=jnp.int32)   # true gallery length via SMEM

    kernel = functools.partial(
        _deepsort_update_kernel, float(min_confidence), gph, tm)

    tlwh_t, cost, min_slab = pl.pallas_call(
        kernel,
        out_shape=(
            jax.ShapeDtypeStruct((2, _BBOX_ROWS, bn_pad), jnp.float32),  # tlwh+keep
            jax.ShapeDtypeStruct((n_pad, m_pad), jnp.bfloat16),          # cost
            jax.ShapeDtypeStruct((2, n_pad, _LANE), jnp.float32),        # row-min
        ),
        grid_spec=pltpu.PrefetchScalarGridSpec(
            num_scalar_prefetch=1,
            grid=(2, n_pad // tn, gph),
            in_specs=[
                pl.BlockSpec((_BBOX_ROWS, _LANE), lambda h, i, j, ms: (0, i)),
                pl.BlockSpec((tn, d), lambda h, i, j, ms: (i, 0)),
                pl.BlockSpec((d, tm), lambda h, i, j, ms: (0, h * gph + j)),
            ],
            out_specs=(
                pl.BlockSpec((None, _BBOX_ROWS, _LANE),
                             lambda h, i, j, ms: (h, 0, i)),
                pl.BlockSpec((tn, tm), lambda h, i, j, ms: (i, h * gph + j)),
                pl.BlockSpec((None, tn, _LANE), lambda h, i, j, ms: (h, i, 0)),
            ),
            scratch_shapes=[pltpu.VMEM((tn, d), jnp.bfloat16)],   # normalized dets
        ),
        compiler_params=pltpu.CompilerParams(
            dimension_semantics=("parallel", "parallel", "arbitrary"),
            vmem_limit_bytes=32 * 1024 * 1024),
    )(m_scalar, bbox_t, det_p, gal_t)

    tlwh = tlwh_t[0, 0:4, :n].T
    keep = tlwh_t[0, 4, :n]
    min_cost = jnp.minimum(min_slab[0, :n, 0], min_slab[1, :n, 0])
    return tlwh, keep, cost[:n, :m], min_cost


# -----------------------------------------------------------------------------
# Thin module mirror
# -----------------------------------------------------------------------------
class TrackHeadDeepSortPallas:
    def __init__(self, min_confidence=MIN_CONFIDENCE):
        self.min_confidence = min_confidence
        self._gallery_norm = None
        # The PyTorch module creates an empty nn.ModuleList() for fcs and never
        # fills it, so there are no trainable parameters used by forward().

    def forward(self, x):
        # Matches the PyTorch module exactly: forward() returns None.
        return None

    def set_gallery(self, gallery_features):
        # Gallery features persist across frames in DeepSORT: normalize once,
        # outside the per-frame kernel.
        g = gallery_features.astype(jnp.float32)
        inv = lax.rsqrt(jnp.sum(g * g, axis=-1, keepdims=True) + 1e-12)
        self._gallery_norm = g * inv

    def update_hot_path(self, bbox_xyxy, confidences, det_features, *, tile_m=2048):
        assert self._gallery_norm is not None, "call set_gallery() first"
        # TODO(synk): greedy NMS, Kalman predict/update and track lifecycle are
        # host-side data-dependent control flow; no clean Pallas equivalent.
        # TODO(synk): the DeepSORT Extractor CNN architecture is not defined in
        # this module; its feature vectors are taken as an input here.
        return deepsort_update_pallas(
            bbox_xyxy, confidences, det_features, self._gallery_norm,
            min_confidence=self.min_confidence, tile_m=tile_m)


# -----------------------------------------------------------------------------
# Pure-JAX reference (f32)
# -----------------------------------------------------------------------------
def _reference(bbox_xyxy, confidences, det_features, gallery_features):
    x1, y1, x2, y2 = (bbox_xyxy[:, i] for i in range(4))
    w = jnp.maximum(jnp.trunc(x2 - x1), 0.0)
    h = jnp.maximum(jnp.trunc(y2 - y1), 0.0)
    tlwh = jnp.stack([x1 - w / 2, y1 - h / 2, w, h], axis=1)
    keep = (confidences > MIN_CONFIDENCE).astype(jnp.float32)
    an = det_features * lax.rsqrt(
        jnp.sum(det_features * det_features, axis=-1, keepdims=True) + 1e-12)
    bn = gallery_features * lax.rsqrt(
        jnp.sum(gallery_features * gallery_features, axis=-1, keepdims=True) + 1e-12)
    cost = 1.0 - an @ bn.T
    return tlwh, keep, cost, jnp.min(cost, axis=1)


if __name__ == "__main__":
    key = jax.random.PRNGKey(0)
    k1, k2, k3, k4 = jax.random.split(key, 4)

    N_DET, N_GAL, FEAT_DIM = 8, 600, 128

    # Deterministic synthetic detections inside a 64x64 image.
    xy = jax.random.uniform(k1, (N_DET, 2), minval=2.0, maxval=40.0)
    wh = jax.random.uniform(k2, (N_DET, 2), minval=4.0, maxval=20.0)
    bbox_xyxy = jnp.concatenate([xy, xy + wh], axis=1).astype(jnp.float32)
    confidences = jax.random.uniform(k3, (N_DET,), minval=0.0, maxval=1.0)
    feats = jax.random.normal(k4, (N_DET + N_GAL, FEAT_DIM), dtype=jnp.float32)
    det_features, gallery_features = feats[:N_DET], feats[N_DET:]

    head = TrackHeadDeepSortPallas()
    assert head.forward(det_features) is None  # PyTorch forward semantics
    head.set_gallery(gallery_features)

    ref_tlwh, ref_keep, ref_cost, ref_min = _reference(
        bbox_xyxy, confidences, det_features, gallery_features)

    # tile_m=2048 -> gallery collapsed to one tile per half (grid (2,1,1));
    # tile_m=256  -> two gallery tiles per half, exercising the running-min
    # accumulation and the last-tile padding mask.
    for tm_cfg in (2048, 256):
        tlwh, keep, cost, min_cost = head.update_hot_path(
            bbox_xyxy, confidences, det_features, tile_m=tm_cfg)
        jax.block_until_ready((tlwh, keep, cost, min_cost))

        assert jnp.allclose(tlwh, ref_tlwh, atol=1e-5), "tlwh mismatch"
        assert jnp.allclose(keep, ref_keep), "keep mismatch"
        # bf16 feature/cost path -> relaxed tolerances (fine for association).
        assert jnp.allclose(cost.astype(jnp.float32), ref_cost, atol=2e-2), \
            "cost mismatch"
        assert jnp.allclose(min_cost, ref_min, atol=2e-2), "min_cost mismatch"

    print("KERNEL_OK")
</pallas_src>

<mosaic_0001>
module attributes {stable_mosaic.version = 11 : i64} {
  func.func @_deepsort_update_kernel(%arg0: i32, %arg1: i32, %arg2: i32, %arg3: memref<1xi32, #tpu.memory_space<smem>>, %arg4: memref<8x128xf32, #tpu.memory_space<vmem>>, %arg5: memref<8x128xbf16, #tpu.memory_space<vmem>>, %arg6: memref<128x512xbf16, #tpu.memory_space<vmem>>, %arg7: memref<1x8x128xf32, #tpu.memory_space<vmem>>, %arg8: memref<8x512xbf16, #tpu.memory_space<vmem>>, %arg9: memref<1x8x128xf32, #tpu.memory_space<vmem>>, %arg10: memref<8x128xbf16, #tpu.memory_space<vmem>>) attributes {dimension_semantics = [#tpu.dimension_semantics<parallel>, #tpu.dimension_semantics<parallel>, #tpu.dimension_semantics<arbitrary>], iteration_bounds = array<i64: 2, 1, 1>, scalar_prefetch = 1 : i64, scratch_operands = 1 : i64, tpu.core_type = #tpu.core_type<tc>, window_params = [{transform_indices = @transform_0, window_bounds = array<i64: 8, 128>}, {transform_indices = @transform_1, window_bounds = array<i64: 8, 128>}, {transform_indices = @transform_2, window_bounds = array<i64: 128, 512>}, {transform_indices = @transform_3, window_bounds = array<i64: 1, 8, 128>}, {transform_indices = @transform_4, window_bounds = array<i64: 8, 512>}, {transform_indices = @transform_5, window_bounds = array<i64: 1, 8, 128>}]} {
    %c0_i32 = arith.constant 0 : i32
    %0 = arith.cmpi eq, %arg2, %c0_i32 : i32
    %1 = arith.extui %0 : i1 to i32
    %c0_i32_0 = arith.constant 0 : i32
    %2 = arith.cmpi ne, %1, %c0_i32_0 : i32
    scf.if %2 {
      %c0_12 = arith.constant 0 : index
      %c0_13 = arith.constant 0 : index
      %22 = vector.load %arg4[%c0_12, %c0_13] : memref<8x128xf32, #tpu.memory_space<vmem>>, vector<8x128xf32>
      %23 = tpu.iota {dimensions = array<i32: 0>} : vector<8x128xi32>
      %c6_i32 = arith.constant 6 : i32
      %24 = tpu.dynamic_rotate %22 by %c6_i32 dim 0 : vector<8x128xf32>, i32 -> vector<8x128xf32>
      %25 = arith.subf %24, %22 : vector<8x128xf32>
      %cst_14 = arith.constant 0.000000e+00 : f32
      %26 = vector.broadcast %cst_14 : f32 to vector<8x128xf32>
      %27 = arith.cmpf olt, %25, %26 : vector<8x128xf32>
      %28 = math.ceil %25 : vector<8x128xf32>
      %29 = math.floor %25 : vector<8x128xf32>
      %30 = arith.select %27, %28, %29 : vector<8x128xi1>, vector<8x128xf32>
      %cst_15 = arith.constant 0.000000e+00 : f32
      %31 = vector.broadcast %cst_15 : f32 to vector<8x128xf32>
      %32 = arith.maximumf %30, %31 : vector<8x128xf32>
      %c2_i32 = arith.constant 2 : i32
      %33 = tpu.dynamic_rotate %32 by %c2_i32 dim 0 : vector<8x128xf32>, i32 -> vector<8x128xf32>
      %cst_16 = arith.constant 5.000000e-01 : f32
      %34 = vector.broadcast %cst_16 : f32 to vector<8x128xf32>
      %35 = arith.mulf %34, %32 : vector<8x128xf32>
      %36 = arith.subf %22, %35 : vector<8x128xf32>
      %cst_17 = arith.constant 3.000000e-01 : f32
      %37 = vector.broadcast %cst_17 : f32 to vector<8x128xf32>
      %38 = arith.cmpf ogt, %22, %37 : vector<8x128xf32>
      %39 = arith.extui %38 : vector<8x128xi1> to vector<8x128xi32>
      %40 = arith.sitofp %39 : vector<8x128xi32> to vector<8x128xf32>
      %c2_i32_18 = arith.constant 2 : i32
      %41 = vector.broadcast %c2_i32_18 : i32 to vector<8x128xi32>
      %42 = arith.cmpi slt, %23, %41 : vector<8x128xi32>
      %c4_i32 = arith.constant 4 : i32
      %43 = vector.broadcast %c4_i32 : i32 to vector<8x128xi32>
      %44 = arith.cmpi slt, %23, %43 : vector<8x128xi32>
      %c4_i32_19 = arith.constant 4 : i32
      %45 = vector.broadcast %c4_i32_19 : i32 to vector<8x128xi32>
      %46 = arith.cmpi eq, %23, %45 : vector<8x128xi32>
      %cst_20 = arith.constant 0.000000e+00 : f32
      %47 = vector.broadcast %cst_20 : f32 to vector<8x128xf32>
      %48 = arith.select %46, %40, %47 : vector<8x128xi1>, vector<8x128xf32>
      %49 = arith.select %44, %33, %48 : vector<8x128xi1>, vector<8x128xf32>
      %50 = arith.select %42, %36, %49 : vector<8x128xi1>, vector<8x128xf32>
      %c0_21 = arith.constant 0 : index
      %c0_22 = arith.constant 0 : index
      %c0_23 = arith.constant 0 : index
      %51 = vector.load %arg7[%c0_21, %c0_22, %c0_23] : memref<1x8x128xf32, #tpu.memory_space<vmem>>, vector<1x8x128xf32>
      %52 = vector.shape_cast %51 : vector<1x8x128xf32> to vector<8x128xf32>
      %53 = vector.shape_cast %50 : vector<8x128xf32> to vector<1x8x128xf32>
      tpu.vector_store %arg7[%c0_21, %c0_22, %c0_23], %53 {strides = array<i32>} : memref<1x8x128xf32, #tpu.memory_space<vmem>>, vector<1x8x128xf32>,
      %c0_24 = arith.constant 0 : index
      %c0_25 = arith.constant 0 : index
      %54 = vector.load %arg5[%c0_24, %c0_25] : memref<8x128xbf16, #tpu.memory_space<vmem>>, vector<8x128xbf16>
      %55 = arith.extf %54 : vector<8x128xbf16> to vector<8x128xf32>
      %56 = arith.mulf %55, %55 : vector<8x128xf32>
      %cst_26 = arith.constant dense<0.000000e+00> : vector<8xf32>
      %57 = vector.multi_reduction <add>, %56, %cst_26 [1] : vector<8x128xf32> to vector<8xf32>
      %58 = vector.shape_cast %57 : vector<8xf32> to vector<8x1xf32>
      %cst_27 = arith.constant 9.99999996E-13 : f32
      %59 = vector.broadcast %cst_27 : f32 to vector<8x1xf32>
      %60 = arith.addf %58, %59 : vector<8x1xf32>
      %61 = math.rsqrt %60 : vector<8x1xf32>
      %62 = vector.broadcast %61 : vector<8x1xf32> to vector<8x128xf32>
      %63 = arith.mulf %55, %62 : vector<8x128xf32>
      %64 = arith.truncf %63 : vector<8x128xf32> to vector<8x128xbf16>
      %c0_28 = arith.constant 0 : index
      %c0_29 = arith.constant 0 : index
      %65 = vector.load %arg10[%c0_28, %c0_29] : memref<8x128xbf16, #tpu.memory_space<vmem>>, vector<8x128xbf16>
      tpu.vector_store %arg10[%c0_28, %c0_29], %64 {strides = array<i32>} : memref<8x128xbf16, #tpu.memory_space<vmem>>, vector<8x128xbf16>,
      %cst_30 = arith.constant 0x7F800000 : f32
      %66 = vector.broadcast %cst_30 : f32 to vector<8x128xf32>
      %c0_31 = arith.constant 0 : index
      %c0_32 = arith.constant 0 : index
      %c0_33 = arith.constant 0 : index
      %67 = vector.load %arg9[%c0_31, %c0_32, %c0_33] : memref<1x8x128xf32, #tpu.memory_space<vmem>>, vector<1x8x128xf32>
      %68 = vector.shape_cast %67 : vector<1x8x128xf32> to vector<8x128xf32>
      %69 = vector.shape_cast %66 : vector<8x128xf32> to vector<1x8x128xf32>
      tpu.vector_store %arg9[%c0_31, %c0_32, %c0_33], %69 {strides = array<i32>} : memref<1x8x128xf32, #tpu.memory_space<vmem>>, vector<1x8x128xf32>,
    } else {
    }
    %c0 = arith.constant 0 : index
    %c0_1 = arith.constant 0 : index
    %3 = vector.load %arg10[%c0, %c0_1] : memref<8x128xbf16, #tpu.memory_space<vmem>>, vector<8x128xbf16>
    %c0_2 = arith.constant 0 : index
    %c0_3 = arith.constant 0 : index
    %4 = vector.load %arg6[%c0_2, %c0_3] : memref<128x512xbf16, #tpu.memory_space<vmem>>, vector<128x512xbf16>
    %cst = arith.constant dense<0.000000e+00> : vector<8x512xf32>
    %5 = tpu.matmul %3, %4, %cst {dimension_numbers = #tpu.dot_dimension_numbers<[1], [0], [0], [1], [0, 0, 1, 1], [], []>} : vector<8x128xbf16>, vector<128x512xbf16>, vector<8x512xf32> -> vector<8x512xf32>
    %cst_4 = arith.constant 1.000000e+00 : f32
    %6 = vector.broadcast %cst_4 : f32 to vector<8x512xf32>
    %7 = arith.subf %6, %5 : vector<8x512xf32>
    %8 = arith.truncf %7 : vector<8x512xf32> to vector<8x512xbf16>
    %c0_5 = arith.constant 0 : index
    %c0_6 = arith.constant 0 : index
    %9 = vector.load %arg8[%c0_5, %c0_6] : memref<8x512xbf16, #tpu.memory_space<vmem>>, vector<8x512xbf16>
    tpu.vector_store %arg8[%c0_5, %c0_6], %8 {strides = array<i32>} : memref<8x512xbf16, #tpu.memory_space<vmem>>, vector<8x512xbf16>,
    %c0_7 = arith.constant 0 : index
    %10 = memref.load %arg3[%c0_7] : memref<1xi32, #tpu.memory_space<smem>>
    %c1_i32 = arith.constant 1 : i32
    %11 = arith.muli %arg0, %c1_i32 : i32
    %12 = arith.addi %11, %arg2 : i32
    %c512_i32 = arith.constant 512 : i32
    %13 = arith.muli %12, %c512_i32 : i32
    %c512_i32_8 = arith.constant 512 : i32
    %14 = arith.addi %13, %c512_i32_8 : i32
    %15 = arith.cmpi sgt, %14, %10 : i32
    %16 = arith.extui %15 : i1 to i32
    %c0_i32_9 = arith.constant 0 : i32
    %17 = arith.cmpi ne, %16, %c0_i32_9 : i32
    scf.if %17 {
      %22 = tpu.iota {dimensions = array<i32: 1>} : vector<8x512xi32>
      %23 = vector.broadcast %13 : i32 to vector<8x512xi32>
      %24 = arith.addi %23, %22 : vector<8x512xi32>
      %25 = vector.broadcast %10 : i32 to vector<8x512xi32>
      %26 = arith.cmpi slt, %24, %25 : vector<8x512xi32>
      %cst_12 = arith.constant 0x7F800000 : f32
      %27 = vector.broadcast %cst_12 : f32 to vector<8x512xf32>
      %28 = arith.select %26, %7, %27 : vector<8x512xi1>, vector<8x512xf32>
      %cst_13 = arith.constant dense<0x7F800000> : vector<8xf32>
      %29 = vector.multi_reduction <minimumf>, %28, %cst_13 [1] : vector<8x512xf32> to vector<8xf32>
      %30 = vector.shape_cast %29 : vector<8xf32> to vector<8x1xf32>
      %c0_14 = arith.constant 0 : index
      %c0_15 = arith.constant 0 : index
      %c0_16 = arith.constant 0 : index
      %31 = vector.load %arg9[%c0_14, %c0_15, %c0_16] : memref<1x8x128xf32, #tpu.memory_space<vmem>>, vector<1x8x128xf32>
      %32 = vector.shape_cast %31 : vector<1x8x128xf32> to vector<8x128xf32>
      %33 = vector.shape_cast %30 : vector<8x1xf32> to vector<8x1xf32>
      %34 = vector.broadcast %33 : vector<8x1xf32> to vector<8x128xf32>
      %35 = arith.minimumf %32, %34 : vector<8x128xf32>
      %c0_17 = arith.constant 0 : index
      %c0_18 = arith.constant 0 : index
      %c0_19 = arith.constant 0 : index
      %36 = vector.load %arg9[%c0_17, %c0_18, %c0_19] : memref<1x8x128xf32, #tpu.memory_space<vmem>>, vector<1x8x128xf32>
      %37 = vector.shape_cast %36 : vector<1x8x128xf32> to vector<8x128xf32>
      %38 = vector.shape_cast %35 : vector<8x128xf32> to vector<1x8x128xf32>
      tpu.vector_store %arg9[%c0_17, %c0_18, %c0_19], %38 {strides = array<i32>} : memref<1x8x128xf32, #tpu.memory_space<vmem>>, vector<1x8x128xf32>,
    } else {
    }
    %c512_i32_10 = arith.constant 512 : i32
    %18 = arith.addi %13, %c512_i32_10 : i32
    %19 = arith.cmpi sle, %18, %10 : i32
    %20 = arith.extui %19 : i1 to i32
    %c0_i32_11 = arith.constant 0 : i32
    %21 = arith.cmpi ne, %20, %c0_i32_11 : i32
    scf.if %21 {
      %cst_12 = arith.constant dense<0x7F800000> : vector<8xf32>
      %22 = vector.multi_reduction <minimumf>, %7, %cst_12 [1] : vector<8x512xf32> to vector<8xf32>
      %23 = vector.shape_cast %22 : vector<8xf32> to vector<8x1xf32>
      %c0_13 = arith.constant 0 : index
      %c0_14 = arith.constant 0 : index
      %c0_15 = arith.constant 0 : index
      %24 = vector.load %arg9[%c0_13, %c0_14, %c0_15] : memref<1x8x128xf32, #tpu.memory_space<vmem>>, vector<1x8x128xf32>
      %25 = vector.shape_cast %24 : vector<1x8x128xf32> to vector<8x128xf32>
      %26 = vector.shape_cast %23 : vector<8x1xf32> to vector<8x1xf32>
      %27 = vector.broadcast %26 : vector<8x1xf32> to vector<8x128xf32>
      %28 = arith.minimumf %25, %27 : vector<8x128xf32>
      %c0_16 = arith.constant 0 : index
      %c0_17 = arith.constant 0 : index
      %c0_18 = arith.constant 0 : index
      %29 = vector.load %arg9[%c0_16, %c0_17, %c0_18] : memref<1x8x128xf32, #tpu.memory_space<vmem>>, vector<1x8x128xf32>
      %30 = vector.shape_cast %29 : vector<1x8x128xf32> to vector<8x128xf32>
      %31 = vector.shape_cast %28 : vector<8x128xf32> to vector<1x8x128xf32>
      tpu.vector_store %arg9[%c0_16, %c0_17, %c0_18], %31 {strides = array<i32>} : memref<1x8x128xf32, #tpu.memory_space<vmem>>, vector<1x8x128xf32>,
    } else {
    }
    return
  }
  func.func @transform_0(%arg0: i32, %arg1: i32, %arg2: i32, %arg3: memref<1xi32, #tpu.memory_space<smem>>) -> (i32, i32) {
    %c0_i32 = arith.constant 0 : i32
    %c0_i32_0 = arith.constant 0 : i32
    return %c0_i32, %arg1 : i32, i32
  }
  func.func @transform_1(%arg0: i32, %arg1: i32, %arg2: i32, %arg3: memref<1xi32, #tpu.memory_space<smem>>) -> (i32, i32) {
    %c0_i32 = arith.constant 0 : i32
    %c0_i32_0 = arith.constant 0 : i32
    return %arg1, %c0_i32 : i32, i32
  }
  func.func @transform_2(%arg0: i32, %arg1: i32, %arg2: i32, %arg3: memref<1xi32, #tpu.memory_space<smem>>) -> (i32, i32) {
    %c1_i32 = arith.constant 1 : i32
    %0 = arith.muli %arg0, %c1_i32 : i32
    %1 = arith.addi %0, %arg2 : i32
    %c0_i32 = arith.constant 0 : i32
    %c0_i32_0 = arith.constant 0 : i32
    return %c0_i32, %1 : i32, i32
  }
  func.func @transform_3(%arg0: i32, %arg1: i32, %arg2: i32, %arg3: memref<1xi32, #tpu.memory_space<smem>>) -> (i32, i32, i32) {
    %c0_i32 = arith.constant 0 : i32
    %c0_i32_0 = arith.constant 0 : i32
    return %arg0, %c0_i32, %arg1 : i32, i32, i32
  }
  func.func @transform_4(%arg0: i32, %arg1: i32, %arg2: i32, %arg3: memref<1xi32, #tpu.memory_space<smem>>) -> (i32, i32) {
    %c1_i32 = arith.constant 1 : i32
    %0 = arith.muli %arg0, %c1_i32 : i32
    %1 = arith.addi %0, %arg2 : i32
    %c0_i32 = arith.constant 0 : i32
    return %arg1, %1 : i32, i32
  }
  func.func @transform_5(%arg0: i32, %arg1: i32, %arg2: i32, %arg3: memref<1xi32, #tpu.memory_space<smem>>) -> (i32, i32, i32) {
    %c0_i32 = arith.constant 0 : i32
    %c0_i32_0 = arith.constant 0 : i32
    return %arg0, %arg1, %c0_i32 : i32, i32, i32
  }
}

</mosaic_0001>

<bundles_post_ra>
// kernel: tpu_custom_call.1
= control target key start
LH: loop header
LB: loop body
LE: loop exit
PB: predicated region body
PF: predicated region fallthrough
CT: control target
= control target key end

     0   :  { %s1772_s0 = inlined_call_operand.<no memory space> [shape: s32[1], index: 0, kind: input, shape index: {}]   ;;  %s1773_s1 = inlined_call_operand.hbm [shape: f32[8,128], index: 1, kind: input, shape index: {}]   ;;  %s1774_s2 = inlined_call_operand.vmem [shape: bf16[8,128], index: 2, kind: input, shape index: {}]   ;;  %s1775_s3 = inlined_call_operand.hbm [shape: bf16[128,1024], index: 3, kind: input, shape index: {}]   ;;  %s1776_s4 = inlined_call_operand.hbm [shape: f32[2,8,128], index: 4, kind: output, shape index: {0}]   ;;  %s1777_s5 = inlined_call_operand.hbm [shape: bf16[8,1024], index: 5, kind: output, shape index: {1}]   ;;  %s1778_s6 = inlined_call_operand.hbm [shape: f32[2,8,128], index: 6, kind: output, shape index: {2}]  }
   0x1   :  { %12 = sst [smem:[#allocation4]] %s1772_s0 }
   0x2   :  { %13 = vsyncpa [#allocation6], 0 }
   0x3   :  { %14 = vsyncpa [#allocation9], 0 }
   0x4   :  { %16 = vsyncpa [#allocation9 + $0x1], 0 }
   0x5   :  { %17 = vsyncpa [#allocation7], 0 }
   0x6   :  { %19 = vsyncpa [#allocation7 + $0x1], 0 }
   0x7   :  { %20 = vsyncpa [#allocation12], 0 }
   0x8   :  { %22 = vsyncpa [#allocation12 + $0x1], 0  ;;  %s1411_s23 = smov 0   ;;  %s1413_s24 = smov 0  }
   0x9   :  { %s1415_s25 = smov 0   ;;  %s1417_s26 = smov 0  }
   0xa   :  { %s1419_s27 = smov 0   ;;  %s1421_s28 = smov 0  }
   0xb LB: > { %s1442_s0 = sadd.s32 4294967295, %s1360_s28   ;;  %s1779_s29 = sadd.s32 4294967294, %s1360_s28   ;;  %s1360_s28 = sphi %s1421_s28, %s28_s28   ;;  %s1356_s27 = sphi %s1419_s27, %s1808_s27   ;;  %s1352_s26 = sphi %s1417_s26, %s1807_s26   ;;  %s1348_s25 = sphi %s1415_s25, %s1806_s25   ;;  %s1344_s24 = sphi %s1413_s24, %s1805_s24   ;;  %s1340_s23 = sphi %s1411_s23, %s1804_s23  }
   0xc   : > { %p115_p0 = scmp.ne.s32.totalorder %s1348_s25, %s1344_s24  ;;  %p116_p1 = scmp.eq.s32.totalorder %s1360_s28, 0 }
   0xd   : > { %p121_p2 = scmp.ne.s32.totalorder %s1344_s24, %s1340_s23  ;;  %p1780_p3 = scmp.eq.s32.totalorder %s1442_s0, 0 }
   0xe   : > { %p147_p4 = scmp.eq.s32.totalorder %s1442_s0, 1  ;;  %p1453_p5 = por %p116_p1, %p115_p0 }
   0xf   : > { %p153_p6 = scmp.eq.s32.totalorder %s1779_s29, 1  ;;  %p1461_p7 = por %p1780_p3, %p121_p2 }
  0x10   : > { %p1465_p8 = por %p147_p4, %p115_p0  ;;  %p953_p10 = scmp.ge.s32.totalorder %s1360_s28, 1 }
  0x11   : > { %s1786_s8 = scalar_select %p1461_p7, 1, 0 }
  0x12   : > { %s1787_s9 = scalar_select %p1465_p8, 1, 0 }
  0x13   : > { %p1469_p9 = por %p153_p6, %p121_p2  ;;  %p218_p11 = scmp.lt.s32.totalorder %s1360_s28, 3 }
  0x14   : > { %s1362_s12 = smov [#allocation5]   ;;  %p1048_p1 = scmp.lt.s32.totalorder %s1360_s28, 2 }
  0x15   : > { %s1788_s10 = scalar_select %p1469_p9, 1, 0 }
  0x16   : > { %p1476_p13 = pnand %p953_p10, %p218_p11  ;;  %s233_s13 = sshll.u32 %s1362_s12, 4  ;;  %s234_s13 = int_to_ptr.vmem [resolvable:$true] %s233_s13 }
  0x17   : > { %p1485_p4 = pnand %p1048_p1, %p1453_p5  ;;  %s47_s16 = sadd.s32 1, %s1356_s27 }
  0x18   : > { %s1789_s11 = scalar_select %p1476_p13, 1, 0 }
  0x19   : > { %p1029_p0 = pneg %p1476_p13  ;;  %p1496_p6 = scmp.ge.s32.totalorder %s47_s16, 2 }
  0x1a   : > { %s1790_s14 = scalar_select %p1485_p4, 1, 0 }
  0x1b   : > { %p1491_p2 = pnand %p1029_p0, %p1780_p3  ;;  %s251_s18 = sand.u32 1, %s1348_s25  }
  0x1c   : > { %s1792_s17 = scalar_select %p1496_p6, 1, 0 }
  0x1d   : > { %s1156_s21 = scalar_lea.hbm %s1773_s1, 128  ;;  %p1158_p10 = pneg %p1491_p2 }
  0x1e   : > { %p1157_p5 = scmp.ne.s32.totalorder %s1773_s1, %s1156_s21  ;;  %p1163_p0 = scmp.lt.u32.totalorder %s1156_s21, %s1773_s1 }
  0x20   : > { %p1159_p11 = pnand %p1158_p10, %p1157_p5 }
  0x22   : > { %p1160_p1 = pneg %p1159_p11 }
  0x24   : > { %p1165_p12 = pnand %p1163_p0, %p1160_p1 }
  0x26   : > { %1168 = shalt.err (!%p1165_p12)
}
  0x27   : > { %s1169_s30 = scalar_lea.vmem %s234_s13, 128  ;;  %p1177_p7 = scmp.lt.s32.totalorder %s234_s13, %s234_s13 }
  0x28   : > { %p1170_p3 = scmp.ne.s32.totalorder %s234_s13, %s1169_s30  ;;  %p1178_p13 = scmp.lt.s32.totalorder %s1169_s30, %s1169_s30 }
  0x2a   : > { %p1172_p9 = pnand %p1170_p3, %p1158_p10  ;;  %p1179_p4 = por %p1178_p13, %p1177_p7 }
  0x2c   : > { %p1173_p8 = pneg %p1172_p9 }
  0x2e   : > { %p1180_p6 = pnand %p1179_p4, %p1173_p8 }
  0x30   : > { %1183 = shalt.err (!%p1180_p6)
}
  0x31   : > { %1032 = dma.hbm_to_vmem [thread:$0]  (!%p1491_p2), %s1773_s1, 128, %s234_s13, [#allocation6]  }
  0x32   : > { %p1793_p3 = scmp.ne.s32.totalorder %s1792_s17, 0  ;;  %s957_s29 = sshll.u32 %s251_s18, 8 }
  0x33   : > { %s1013_s21 = sshll.u32 %s1356_s27, 8  ;;  %s255_s12 = scalar_lea.vmem [#allocation8], %s957_s29 }
  0x34   : > { %s1810_s16 = smov (%p1793_p3, %s47_s16), 0  ;;  %s1527_s7 = scalar_lea.hbm %s1775_s3, %s1013_s21 }
  0x35   : > { %s105_s30 = ssub.s32 %s1356_s27, %s1810_s16  ;;  %s263_s19 = sshll.u32 %s255_s12, 4  ;;  %s1534_s19 = int_to_ptr.vmem [resolvable:$true] %s263_s19 }
  0x36   : > { %p106_p7 = scmp.eq.s32.totalorder %s105_s30, 0  ;;  %s1794_s13 = sadd.s32 1, %s1348_s25 }
  0x37   : > { %s1536_s20 = scalar_lea.sflag [#allocation9], %s251_s18  ;;  %s1184_s30 = scalar_lea.hbm %s1527_s7, 4096 }
  0x38   : > { %s1532_s17 = scalar_select %p106_p7, %s1348_s25, %s1794_s13  }
  0x39   : > { %p1185_p8 = scmp.ne.s32.totalorder %s1527_s7, %s1184_s30  ;;  %p1795_p9 = scmp.ne.s32.totalorder %s1790_s14, 0 }
  0x3a   : > { %s1189_s29 = scalar_lea.hbm %s1775_s3, 8192  ;;  %p1190_p2 = scmp.lt.u32.totalorder %s1527_s7, %s1775_s3 }
  0x3b   : > { %p1186_p12 = pneg %p1795_p9  ;;  %p1191_p6 = scmp.lt.u32.totalorder %s1189_s29, %s1184_s30 }
  0x3c   : > { %p1193_p10 = scmp.lt.u32.totalorder %s1184_s30, %s1527_s7 }
  0x3d   : > { %p1187_p13 = pnand %p1186_p12, %p1185_p8  ;;  %p1192_p5 = por %p1191_p6, %p1190_p2 }
  0x3f   : > { %p1188_p4 = pneg %p1187_p13  ;;  %p1194_p11 = por %p1193_p10, %p1192_p5 }
  0x41   : > { %p1195_p1 = pnand %p1194_p11, %p1188_p4 }
  0x43   : > { %1198 = shalt.err (!%p1195_p1)
}
  0x44   : > { %s1199_s18 = scalar_lea.vmem %s1534_s19, 4096  ;;  %s1363_s13 = smov [#allocation8]  }
  0x45   : > { %p1200_p0 = scmp.ne.s32.totalorder %s1534_s19, %s1199_s18  ;;  %s1204_s21 = sshll.u32 %s1363_s13, 4  ;;  %s1205_s21 = int_to_ptr.vmem [resolvable:$false] %s1204_s21 }
  0x46   : > { %s1206_s15 = scalar_lea.vmem %s1205_s21, 8192  ;;  %p1207_p8 = scmp.lt.s32.totalorder %s1534_s19, %s1205_s21 }
  0x47   : > { %p1202_p3 = pnand %p1200_p0, %p1186_p12  ;;  %p1208_p13 = scmp.lt.s32.totalorder %s1206_s15, %s1199_s18 }
  0x49   : > { %p1203_p7 = pneg %p1202_p3  ;;  %p1209_p2 = por %p1208_p13, %p1207_p8 }
  0x4b   : > { %p1210_p6 = pnand %p1209_p2, %p1203_p7 }
  0x4d   : > { %1213 = shalt.err (!%p1210_p6)
}
  0x4e   : > { %s1364_s30 = smov 512   ;;  %s1365_s29 = smov 256  }
  0x4f   : > { %s1366_s22 = smov 16   ;;  %p1796_p12 = scmp.ne.s32.totalorder %s1789_s11, 0 }
  0x50   : > { %1036 = dma.hbm_to_vmem [thread:$0]  (!%p1795_p9), %s1527_s7, 4096, %s1534_s19, %s1536_s20, %s1364_s30, %s1365_s29, %s1366_s22  }
  0x51   : > { %275 = sbr.rel (%p1796_p12) target bundleno = 854 (0x356), region = 32  ;;  %p1797_p4 = scmp.eq.s32.totalorder (!%p1796_p12), %s1442_s0, 0 }
  0x58   : > { %1323 = dma.done.wait (%p1797_p4), [#allocation6], 128   ;;  %p1798_p5 = pmov %p1797_p4 }
  0x59   : > { %s1571_s12 = sand.u32 1, %s1344_s24   ;;  %p1799_p9 = scmp.ne.s32.totalorder %s1786_s8, 0 }
  0x5a   : > { %1325 = vsyncadd (%p1798_p5), [#allocation6], 4294967168  ;;  %s962_s18 = sshll.u32 %s1571_s12, 8  ;;  %s282_s13 = scalar_lea.sflag [#allocation9], %s1571_s12 }
  0x5b   : > { %s1575_s21 = scalar_lea.vmem [#allocation8], %s962_s18 }
  0x5c   : > { %1327 = dma.done.wait (%p1799_p9), %s282_s13, 4096  }
  0x5d   : > { %1329 = vsyncadd (%p1799_p9), %s282_s13, 4294963200  ;;  %s963_s11 = sshll.u32 %s1571_s12, 3  ;;  %v1367_v0 = vmov inf   ;;  %s1587_s7 = sld [smem:[#allocation4]]  ;;  %v340_v1 = vlaneseq  ;;  %v339_v2 = vld [vmem:[#allocation5] sm:$0xff]  ;;  %v1368_v18 = vmov 0.0  }
  0x5e   : > { %s1584_s14 = scalar_lea.vmem [#allocation13], %s963_s11  ;;  %v362_v3 = vld [vmem:[%s1774_s2] sm:$0xf]  ;;  %v342_v5 = vrot.slane %v339_v2, 2  ;;  %vm352_vm0 = vcmp.gt.f32.partialorder %v339_v2, 0.3 }
  0x5f   : > { %372 = vst [vmem:[%s1584_s14] sm:$0xff] %v1367_v0  ;;  %v341_v4 = vshrl.u32 %v340_v1, 7  ;;  %v1593_v6 = vunpack.c.l.bf16 %v362_v3  ;;  %v1106_v7 = vld [vmem:[%s1575_s21 + $0x4] ss:$16 sps:$4 sm:$0xff]   ;;  %v1108_v8 = vld [vmem:[%s1575_s21 + $0xc] ss:$16 sps:$4 sm:$0xff]   ;;  %v966_v19 = vsel %vm352_vm0, 1.0, %v1368_v18 }
  0x60   : > { %v343_v9 = vsub.f32 %v342_v5, %v339_v2  ;;  %566 = vmatprep.subr.bf16.mxu0 %v1106_v7  ;;  %v1110_v11 = vld [vmem:[%s1575_s21] ss:$16 sps:$4 sm:$0xff]   ;;  %v1111_v12 = vld [vmem:[%s1575_s21 + $0x8] ss:$16 sps:$4 sm:$0xff]   ;;  %607 = vmatprep.subr.bf16.mxu1 %v1108_v8  ;;  %v1112_v13 = vld [vmem:[%s1575_s21 + $0x24] ss:$16 sps:$4 sm:$0xff]  }
  0x61   : > { %v364_v10 = vmul.f32 %v1593_v6, %v1593_v6  ;;  %567 = vmatpush1.bf16.msra.mxu0 %v1110_v11  ;;  %v1114_v16 = vld [vmem:[%s1575_s21 + $0x2c] ss:$16 sps:$4 sm:$0xff]   ;;  %v1116_v17 = vld [vmem:[%s1575_s21 + $0x20] ss:$16 sps:$4 sm:$0xff]   ;;  %vm357_vm2 = vcmp.eq.s32.totalorder %v341_v4, 4  ;;  %608 = vmatpush1.bf16.msra.mxu1 %v1111_v12  ;;  %vm356_vm3 = vcmp.lt.s32.totalorder %v341_v4, 4 }
  0x62   : > { %vm344_vm1 = vcmp.lt.f32.partialorder %v343_v9, 0.0  ;;  %v345_v14 = vceil.f32 %v343_v9  ;;  %v346_v15 = vfloor.f32 %v343_v9  ;;  %568 = vmatprep.subr.bf16.mxu0 %v1112_v13  ;;  %v1117_v20 = vld [vmem:[%s1575_s21 + $0x28] ss:$16 sps:$4 sm:$0xff]   ;;  %609 = vmatprep.subr.bf16.mxu1 %v1114_v16  ;;  %v358_v23 = vsel %vm357_vm2, %v966_v19, 0.0  ;;  %s1608_s20 = scalar_lea.vmem [#allocation10], %s963_s11  ;;  %s1001_s15 = sshll.u32 %s1352_s26, 9 }
  0x63   : > { %365 = vadd.xlane.f32.xlu0 %v364_v10  ;;  %vm355_vm4 = vcmp.lt.s32.totalorder %v341_v4, 2  ;;  %v1118_v29 = vld [vmem:[%s1575_s21 + $0x44] ss:$16 sps:$4 sm:$0xff]   ;;  %v1120_v30 = vld [vmem:[%s1575_s21 + $0x4c] ss:$16 sps:$4 sm:$0xff]   ;;  %v1369_v53 = vmov 0  }
  0x64   : > { %v347_v21 = vsel %vm344_vm1, %v345_v14, %v346_v15  ;;  %v1122_v31 = vld [vmem:[%s1575_s21 + $0x40] ss:$16 sps:$4 sm:$0xff]   ;;  %v1123_v32 = vld [vmem:[%s1575_s21 + $0x48] ss:$16 sps:$4 sm:$0xff]   ;;  %v1124_v33 = vld [vmem:[%s1575_s21 + $0x64] ss:$16 sps:$4 sm:$0xff]   ;;  %598 = vmatprep.mubr.bf16.mxu0 %v1369_v53  ;;  %639 = vmatprep.mubr.bf16.mxu1 %v1369_v53 }
  0x65   : > { %v348_v22 = vmax.f32 %v347_v21, 0.0  ;;  %569 = vmatpush1.bf16.msra.mxu0 %v1116_v17  ;;  %610 = vmatpush1.bf16.msra.mxu1 %v1117_v20  ;;  %v1126_v34 = vld [vmem:[%s1575_s21 + $0x6c] ss:$16 sps:$4 sm:$0xff]   ;;  %v1128_v35 = vld [vmem:[%s1575_s21 + $0x60] ss:$16 sps:$4 sm:$0xff]   ;;  %s1637_s30 = sadd.s32 512, %s1001_s15 }
  0x66   : > { %570 = vmatprep.subr.bf16.mxu0 %v1118_v29  ;;  %611 = vmatprep.subr.bf16.mxu1 %v1120_v30  ;;  %v1129_v36 = vld [vmem:[%s1575_s21 + $0x68] ss:$16 sps:$4 sm:$0xff]   ;;  %v1130_v37 = vld [vmem:[%s1575_s21 + $0x84] ss:$16 sps:$4 sm:$0xff]   ;;  %v1132_v38 = vld [vmem:[%s1575_s21 + $0x8c] ss:$16 sps:$4 sm:$0xff]   ;;  %p1002_p10 = scmp.le.s32.totalorder %s1637_s30, %s1587_s7 }
  0x67   : > { %v349_v24 = vrot.slane %v348_v22, 6  ;;  %v350_v25 = vmul.f32 0.5, %v348_v22  ;;  %v1134_v39 = vld [vmem:[%s1575_s21 + $0x80] ss:$16 sps:$4 sm:$0xff]   ;;  %v1135_v40 = vld [vmem:[%s1575_s21 + $0x88] ss:$16 sps:$4 sm:$0xff]   ;;  %v683_v12 = vstv (!%p1002_p10), %s1001_s15  ;;  %v688_v13 = vstv (!%p1002_p10), %s1587_s7 }
  0x68   : > { %v1136_v41 = vld [vmem:[%s1575_s21 + $0xa4] ss:$16 sps:$4 sm:$0xff]   ;;  %v1138_v42 = vld [vmem:[%s1575_s21 + $0xac] ss:$16 sps:$4 sm:$0xff]   ;;  %v1140_v43 = vld [vmem:[%s1575_s21 + $0xa0] ss:$16 sps:$4 sm:$0xff]  }
  0x69   : > { %v351_v26 = vsub.f32 %v339_v2, %v350_v25  ;;  %v359_v27 = vsel %vm356_vm3, %v349_v24, %v358_v23  ;;  %571 = vmatpush1.bf16.msra.mxu0 %v1122_v31  ;;  %612 = vmatpush1.bf16.msra.mxu1 %v1123_v32  ;;  %v1141_v44 = vld [vmem:[%s1575_s21 + $0xa8] ss:$16 sps:$4 sm:$0xff]   ;;  %v1142_v45 = vld [vmem:[%s1575_s21 + $0xc4] ss:$16 sps:$4 sm:$0xff]   ;;  %v1144_v46 = vld [vmem:[%s1575_s21 + $0xcc] ss:$16 sps:$4 sm:$0xff]  }
  0x6a   : > { %572 = vmatprep.subr.bf16.mxu0 %v1124_v33  ;;  %613 = vmatprep.subr.bf16.mxu1 %v1126_v34  ;;  %v1146_v47 = vld [vmem:[%s1575_s21 + $0xc0] ss:$16 sps:$4 sm:$0xff]   ;;  %v1147_v48 = vld [vmem:[%s1575_s21 + $0xc8] ss:$16 sps:$4 sm:$0xff]   ;;  %v1148_v49 = vld [vmem:[%s1575_s21 + $0xe4] ss:$16 sps:$4 sm:$0xff]  }
  0x6b   : > { %v360_v28 = vsel %vm355_vm4, %v351_v26, %v359_v27  ;;  %v1150_v50 = vld [vmem:[%s1575_s21 + $0xec] ss:$16 sps:$4 sm:$0xff]   ;;  %v1152_v51 = vld [vmem:[%s1575_s21 + $0xe0] ss:$16 sps:$4 sm:$0xff]   ;;  %v1153_v52 = vld [vmem:[%s1575_s21 + $0xe8] ss:$16 sps:$4 sm:$0xff]  }
  0x6c   : > { %361 = vst [vmem:[%s1608_s20] sm:$0xff] %v360_v28  ;;  %s964_s29 = sshll.u32 %s1571_s12, 4  ;;  %v679_v11 = vand.u32 (!%p1002_p10), 127, %v340_v1  ;;  %v702_v27 = vld [vmem:[%s1584_s14] sm:$0xff] (!%p1002_p10) }
  0x6d   : > { %573 = vmatpush1.bf16.msra.mxu0 %v1128_v35  ;;  %614 = vmatpush1.bf16.msra.mxu1 %v1129_v36  ;;  %s1640_s22 = scalar_lea.vmem [#allocation11], %s964_s29 }
  0x6e   : > { %574 = vmatprep.subr.bf16.mxu0 %v1130_v37  ;;  %615 = vmatprep.subr.bf16.mxu1 %v1132_v38  ;;  %v680_v14 = vadd.s32 (!%p1002_p10), 128, %v679_v11  ;;  %v681_v15 = vadd.s32 (!%p1002_p10), 256, %v679_v11  ;;  %v682_v16 = vadd.s32 (!%p1002_p10), 384, %v679_v11  ;;  %v684_v17 = vadd.s32 (!%p1002_p10), %v683_v12, %v679_v11 }
  0x70   : > { %v685_v18 = vadd.s32 (!%p1002_p10), %v683_v12, %v680_v14  ;;  %v686_v19 = vadd.s32 (!%p1002_p10), %v683_v12, %v681_v15  ;;  %v687_v20 = vadd.s32 (!%p1002_p10), %v683_v12, %v682_v16  ;;  %vm689_vm5 = vcmp.lt.s32.totalorder (!%p1002_p10), %v684_v17, %v688_v13 }
  0x71   : > { %575 = vmatpush1.bf16.msra.mxu0 %v1134_v39  ;;  %616 = vmatpush1.bf16.msra.mxu1 %v1135_v40 }
  0x72   : > { %576 = vmatprep.subr.bf16.mxu0 %v1136_v41  ;;  %617 = vmatprep.subr.bf16.mxu1 %v1138_v42  ;;  %vm690_vm6 = vcmp.lt.s32.totalorder (!%p1002_p10), %v685_v18, %v688_v13  ;;  %vm691_vm7 = vcmp.lt.s32.totalorder (!%p1002_p10), %v686_v19, %v688_v13  ;;  %vm692_vm8 = vcmp.lt.s32.totalorder (!%p1002_p10), %v687_v20, %v688_v13 }
  0x75   : > { %577 = vmatpush1.bf16.msra.mxu0 %v1140_v43  ;;  %618 = vmatpush1.bf16.msra.mxu1 %v1141_v44 }
  0x76   : > { %578 = vmatprep.subr.bf16.mxu0 %v1142_v45  ;;  %619 = vmatprep.subr.bf16.mxu1 %v1144_v46 }
  0x79   : > { %579 = vmatpush1.bf16.msra.mxu0 %v1146_v47  ;;  %620 = vmatpush1.bf16.msra.mxu1 %v1147_v48 }
  0x7a   : > { %580 = vmatprep.subr.bf16.mxu0 %v1148_v49  ;;  %621 = vmatprep.subr.bf16.mxu1 %v1150_v50 }
  0x7d   : > { %581 = vmatpush1.bf16.msra.mxu0 %v1152_v51  ;;  %622 = vmatpush1.bf16.msra.mxu1 %v1153_v52 }
  0xf0   : > { %v366_v54 = vpop.xlane.xlu0 %365 }
  0xf1   : > { %v367_v55 = vadd.f32 1e-12, %v366_v54 }
  0xf3   : > { %1154 = vrsqrt.f32 %v367_v55 }
  0xfd   : > { %v1155_v56 = vpop.eup %1154 }
  0xfe   : > { %v369_v57 = vmul.f32 %v1155_v56, %v1593_v6 }
 0x100   : > { %v370_v58 = vpack.c.bf16 %v369_v57, %v369_v57 }
 0x102   : > { %371 = vst [vmem:[#allocation2] sm:$0xf] %v370_v58 }
 0x109   : > { %v373_v59 = vld [vmem:[#allocation2] sm:$0xf] }
 0x10a   : > { %599 = vmatmul.mubr.bf16.vlgmr.msra.gmra.mrb[0].mxu0 %v373_v59  ;;  %640 = vmatmul.mubr.bf16.vlgmr.msra.gmra.mrb[0].mxu1 %v373_v59 }
 0x1dd   : > { %v600_v60 = vpop.f32.mrb[0].mxu0  ;;  %v641_v61 = vpop.f32.mrb[0].mxu1  ;;  %677 = sbr.rel (%p1002_p10) target bundleno = 631 (0x277), region = 48 }
 0x1de   : > { %v648_v62 = vsub.f32 1.0, %v600_v60  ;;  %v650_v63 = vsub.f32 1.0, %v641_v61  ;;  %v602_v0 = vpop.f32.mrb[1].mxu0  ;;  %v643_v2 = vpop.f32.mrb[1].mxu1 }
 0x1df   : > { %v649_v3 = vsub.f32 1.0, %v602_v0  ;;  %v651_v4 = vsub.f32 1.0, %v643_v2  ;;  %v604_v5 = vpop.f32.mrb[2].mxu0  ;;  %v645_v7 = vpop.f32.mrb[2].mxu1 }
 0x1e0   : > { %v605_v6 = vpop.f32.mrb[3].mxu0  ;;  %v646_v8 = vpop.f32.mrb[3].mxu1  ;;  %v693_v21 = vsel (!%p1002_p10), %vm689_vm5, %v648_v62, inf  ;;  %v695_v23 = vsel (!%p1002_p10), %vm691_vm7, %v650_v63, inf }
 0x1e1   : > { %v1014_v9 = vpack.c.bf16 %v649_v3, %v648_v62  ;;  %v1015_v10 = vpack.c.bf16 %v651_v4, %v650_v63  ;;  %v694_v22 = vsel (!%p1002_p10), %vm690_vm6, %v649_v3, inf  ;;  %v696_v24 = vsel (!%p1002_p10), %vm692_vm8, %v651_v4, inf }
 0x1e2   : > { %v697_v1 = vmin.f32 (!%p1002_p10), %v693_v21, %v694_v22  ;;  %v698_v25 = vmin.f32 (!%p1002_p10), %v695_v23, %v696_v24 }
 0x1e3   : > { %668 = vst [vmem:[%s1640_s22] sm:$0xff] %v1014_v9  ;;  %669 = vst [vmem:[%s1640_s22 + $0x8] sm:$0xff] %v1015_v10 }
 0x1e4   : > { %v699_v26 = vmin.f32 %v697_v1, %v698_v25 }
 0x1e6   : > { %700 = vmin.xlane.f32.xlu0 %v699_v26 }
 0x273   : > { %v701_v28 = vpop.xlane.xlu0 %700 }
 0x274   : > { %v703_v29 = vmin.f32 %v702_v27, %v701_v28 }
 0x276   : > { %704 = vst [vmem:[%s1584_s14] sm:$0xff] %v703_v29 }
 0x277 PF: > { %p1003_p11 = scmp.gt.s32.totalorder %s1637_s30, %s1587_s7 }
 0x278   : > { %v709_v30 = vmin.f32 (!%p1003_p11), %v648_v62, %v649_v3  ;;  %v710_v31 = vmin.f32 (!%p1003_p11), %v650_v63, %v651_v4 }
 0x279   : > { %708 = sbr.rel (%p1003_p11) target bundleno = 781 (0x30d), region = 52 }
 0x27a   : > { %v711_v32 = vmin.f32 (!%p1003_p11), %v709_v30, %v710_v31 }
 0x27c   : > { %712 = vmin.xlane.f32.xlu0 (!%p1003_p11), %v711_v32 }
 0x27d   : > { %v714_v33 = vld [vmem:[%s1584_s14] sm:$0xff] (!%p1003_p11) }
 0x309   : > { %v713_v34 = vpop.xlane.xlu0 %712 }
 0x30a   : > { %v715_v35 = vmin.f32 %v714_v33, %v713_v34 }
 0x30c   : > { %716 = vst [vmem:[%s1584_s14] sm:$0xff] %v715_v35 }
 0x30d PF: > { %s722_s18 = sand.u32 1, %s1442_s0   ;;  %s1016_s13 = sshll.u32 %s1352_s26, 8 }
 0x30e   : > { %s1659_s7 = scalar_lea.hbm %s1777_s5, %s1016_s13  ;;  %s759_s8 = sshll.u32 %s1640_s22, 4  ;;  %s1662_s8 = int_to_ptr.vmem [resolvable:$true] %s759_s8 }
 0x30f   : > { %s1007_s19 = sshll.u32 %s1352_s26, 7  ;;  %s1665_s15 = scalar_lea.sflag [#allocation12], %s722_s18 }
 0x310   : > { %s1214_s30 = scalar_lea.vmem %s1662_s8, 256  ;;  %p1800_p0 = scmp.ne.s32.totalorder %s1787_s9, 0 }
 0x311   : > { %p1215_p1 = scmp.ne.s32.totalorder %s1662_s8, %s1214_s30  ;;  %s1370_s0 = smov [#allocation11]  }
 0x312   : > { %s1218_s29 = sshll.u32 %s1370_s0, 4  ;;  %s1219_s29 = int_to_ptr.vmem [resolvable:$false] %s1218_s29 }
 0x313   : > { %p1216_p3 = pnand %p1215_p1, %p1800_p0  ;;  %s1220_s21 = scalar_lea.vmem %s1219_s29, 512 }
 0x314   : > { %p1221_p8 = scmp.lt.s32.totalorder %s1662_s8, %s1219_s29  ;;  %p1222_p13 = scmp.lt.s32.totalorder %s1220_s21, %s1214_s30 }
 0x315   : > { %p1217_p7 = pneg %p1216_p3 }
 0x316   : > { %p1223_p2 = por %p1222_p13, %p1221_p8 }
 0x318   : > { %p1224_p6 = pnand %p1223_p2, %p1217_p7 }
 0x31a   : > { %1227 = shalt.err (!%p1224_p6)
}
 0x31b   : > { %s1228_s22 = scalar_lea.hbm %s1659_s7, 256  ;;  %s1232_s11 = scalar_lea.hbm %s1777_s5, 512 }
 0x31c   : > { %p1229_p12 = scmp.ne.s32.totalorder %s1659_s7, %s1228_s22  ;;  %p1233_p9 = scmp.lt.u32.totalorder %s1659_s7, %s1777_s5 }
 0x31d   : > { %p1234_p10 = scmp.lt.u32.totalorder %s1232_s11, %s1228_s22  ;;  %p1236_p1 = scmp.lt.u32.totalorder %s1228_s22, %s1659_s7 }
 0x31e   : > { %p1230_p4 = pnand %p1229_p12, %p1800_p0 }
 0x31f   : > { %p1235_p11 = por %p1234_p10, %p1233_p9 }
 0x320   : > { %p1231_p5 = pneg %p1230_p4 }
 0x321   : > { %p1237_p3 = por %p1236_p1, %p1235_p11 }
 0x323   : > { %p1238_p7 = pnand %p1237_p3, %p1231_p5 }
 0x325   : > { %1241 = shalt.err (!%p1238_p7)
}
 0x326   : > { %1024 = dma.vmem_to_hbm [thread:$0]  (%p1800_p0), %s1662_s8, 256, %s1659_s7, %s1665_s15  }
 0x327   : > { %s1694_s18 = scalar_lea.hbm %s1776_s4, %s1007_s19  ;;  %s742_s22 = sshll.u32 %s1608_s20, 4  ;;  %s1697_s22 = int_to_ptr.vmem [resolvable:$true] %s742_s22 }
 0x328   : > { %s1704_s0 = scalar_lea.hbm %s1778_s6, %s1007_s19  ;;  %s718_s29 = scalar_lea.sflag [#allocation7], %s1571_s12 }
 0x329   : > { %s1242_s7 = scalar_lea.vmem %s1697_s22, 128  ;;  %s1371_s8 = smov [#allocation10]  }
 0x32a   : > { %p1243_p8 = scmp.ne.s32.totalorder %s1697_s22, %s1242_s7  ;;  %s1246_s30 = sshll.u32 %s1371_s8, 4  ;;  %s1247_s30 = int_to_ptr.vmem [resolvable:$false] %s1246_s30 }
 0x32b   : > { %s1248_s20 = scalar_lea.vmem %s1247_s30, 256  ;;  %p1249_p6 = scmp.lt.s32.totalorder %s1697_s22, %s1247_s30 }
 0x32c   : > { %p1244_p13 = pnand %p1243_p8, %p1800_p0  ;;  %p1250_p12 = scmp.lt.s32.totalorder %s1248_s20, %s1242_s7 }
 0x32e   : > { %p1245_p2 = pneg %p1244_p13  ;;  %p1251_p4 = por %p1250_p12, %p1249_p6 }
 0x330   : > { %p1252_p5 = pnand %p1251_p4, %p1245_p2 }
 0x332   : > { %1255 = shalt.err (!%p1252_p5)
}
 0x333   : > { %s1256_s26 = scalar_lea.hbm %s1694_s18, 128  ;;  %s1260_s21 = scalar_lea.hbm %s1776_s4, 256 }
 0x334   : > { %p1257_p9 = scmp.ne.s32.totalorder %s1694_s18, %s1256_s26  ;;  %p1261_p1 = scmp.lt.u32.totalorder %s1694_s18, %s1776_s4 }
 0x335   : > { %p1262_p3 = scmp.lt.u32.totalorder %s1260_s21, %s1256_s26  ;;  %p1264_p8 = scmp.lt.u32.totalorder %s1256_s26, %s1694_s18 }
 0x336   : > { %p1258_p10 = pnand %p1257_p9, %p1800_p0 }
 0x337   : > { %p1263_p7 = por %p1262_p3, %p1261_p1 }
 0x338   : > { %p1259_p11 = pneg %p1258_p10 }
 0x339   : > { %p1265_p13 = por %p1264_p8, %p1263_p7 }
 0x33b   : > { %p1266_p2 = pnand %p1265_p13, %p1259_p11 }
 0x33d   : > { %1269 = shalt.err (!%p1266_p2)
}
 0x33e   : > { %1023 = dma.vmem_to_hbm [thread:$0]  (%p1800_p0), %s1697_s22, 128, %s1694_s18, %s718_s29  }
 0x33f   : > { %s773_s7 = sshll.u32 %s1584_s14, 4  ;;  %s1372_s30 = smov [#allocation13]   ;;  %s774_s7 = int_to_ptr.vmem [resolvable:$true] %s773_s7 }
 0x340   : > { %s1270_s8 = scalar_lea.vmem %s774_s7, 128  ;;  %s1274_s20 = sshll.u32 %s1372_s30, 4  ;;  %s1275_s20 = int_to_ptr.vmem [resolvable:$false] %s1274_s20 }
 0x341   : > { %p1271_p6 = scmp.ne.s32.totalorder %s774_s7, %s1270_s8  ;;  %s1276_s26 = scalar_lea.vmem %s1275_s20, 256 }
 0x342   : > { %p1277_p5 = scmp.lt.s32.totalorder %s774_s7, %s1275_s20  ;;  %p1278_p9 = scmp.lt.s32.totalorder %s1276_s26, %s1270_s8 }
 0x343   : > { %p1272_p12 = pnand %p1271_p6, %p1800_p0 }
 0x344   : > { %p1279_p10 = por %p1278_p9, %p1277_p5 }
 0x345   : > { %p1273_p4 = pneg %p1272_p12 }
 0x347   : > { %p1280_p11 = pnand %p1279_p10, %p1273_p4 }
 0x349   : > { %1283 = shalt.err (!%p1280_p11)
}
 0x34a   : > { %s1284_s14 = scalar_lea.hbm %s1704_s0, 128  ;;  %s1288_s29 = scalar_lea.hbm %s1778_s6, 256 }
 0x34b   : > { %p1285_p1 = scmp.ne.s32.totalorder %s1704_s0, %s1284_s14  ;;  %p1289_p8 = scmp.lt.u32.totalorder %s1704_s0, %s1778_s6 }
 0x34c   : > { %p1290_p13 = scmp.lt.u32.totalorder %s1288_s29, %s1284_s14  ;;  %p1292_p6 = scmp.lt.u32.totalorder %s1284_s14, %s1704_s0 }
 0x34d   : > { %p1286_p3 = pnand %p1285_p1, %p1800_p0 }
 0x34e   : > { %p1291_p2 = por %p1290_p13, %p1289_p8 }
 0x34f   : > { %p1287_p7 = pneg %p1286_p3 }
 0x350   : > { %p1293_p12 = por %p1292_p6, %p1291_p2 }
 0x352   : > { %p1294_p4 = pnand %p1293_p12, %p1287_p7 }
 0x354   : > { %1297 = shalt.err (!%p1294_p4)
}
 0x355   : > { %1025 = dma.vmem_to_hbm [thread:$0]  (%p1800_p0), %s774_s7, 128, %s1704_s0, %s1665_s15  }
 0x356 PF: > { %s785_s21 = sand.u32 1, %s1340_s23   ;;  %p1801_p5 = scmp.ne.s32.totalorder %s1788_s10, 0 }
 0x357   : > { %p1802_p9 = scmp.ge.s32.totalorder %s1360_s28, 2  ;;  %s786_s13 = scalar_lea.sflag [#allocation7], %s785_s21 }
 0x359   : > { %p1038_p10 = pnand %p1802_p9, %p1801_p5 }
 0x35b   : > { %1331 = dma.done.wait (!%p1038_p10), %s786_s13, 128  }
 0x35c   : > { %1333 = vsyncadd (!%p1038_p10), %s786_s13, 4294967168  ;;  %s1803_s11 = sadd.s32 4294967294, %s1360_s28  }
 0x35d   : > { %s794_s8 = sand.u32 1, %s1803_s11  }
 0x35e   : > { %s795_s30 = scalar_lea.sflag [#allocation12], %s794_s8 }
 0x35f   : > { %1335 = dma.done.wait (!%p1038_p10), %s795_s30, 384  }
 0x360   : > { %1337 = vsyncadd (!%p1038_p10), %s795_s30, 4294966912  ;;  %s28_s28 = sadd.s32 1, %s1360_s28   ;;  %s1804_s23 = smov %s1344_s24 }
 0x361   : > { %p25_p0 = scmp.ge.s32.totalorder %s28_s28, 4   ;;  %s1805_s24 = smov %s1348_s25 }
 0x362   : > { %s1806_s25 = smov %s1532_s17  ;;  %s1807_s26 = smov %s1356_s27 }
 0x363   : > { %s1808_s27 = smov %s1810_s16  ;;  %27 = sbr.rel (!%p25_p0) target bundleno = 11 (0xb), region = 130 }
 0x36a   :  { %809 = vsyncpa [#allocation6], 1 }
 0x36b   :  { %811 = vsyncpa [#allocation6 + $0x1], 1 }
 0x36c   :  { %812 = vsyncpa [#allocation9], 1 }
 0x36d   :  { %814 = vsyncpa [#allocation9 + $0x1], 1 }
 0x36e   :  { %815 = vsyncpa [#allocation7], 1 }
 0x36f   :  { %817 = vsyncpa [#allocation7 + $0x1], 1 }
 0x370   :  { %818 = vsyncpa [#allocation12], 1 }
 0x371   :  { %820 = vsyncpa [#allocation12 + $0x1], 1 }

</bundles_post_ra>
